<compile_context>
chip_gen: v7x
topology: tpu7x:2x2x1
jax: 0.10.0
libtpu: 0.0.40
codegen_flags: <defaults>
</compile_context>

<pallas_src>
import jax
import jax.numpy as jnp
from jax.experimental import pallas as pl
from jax.experimental.pallas import tpu as pltpu


def _round_up(x, m):
    return ((x + m - 1) // m) * m


def _disc_kernel(s_ref, a_ref, w1s_ref, w1a_ref, b1_ref, w2_ref, b2_ref,
                 w3t_ref, b3t_ref, o_ref):
    # Layer 1: two MXU dots accumulate in f32 (equivalent to concat + one dot,
    # but avoids the cross-lane relayout of a 16-wide concat).
    h1 = (jnp.dot(s_ref[...], w1s_ref[...], preferred_element_type=jnp.float32)
          + jnp.dot(a_ref[...], w1a_ref[...], preferred_element_type=jnp.float32)
          + b1_ref[...])
    h1 = jnp.maximum(h1, 0.0)

    # Layer 2 (dominant MXU work).
    h2 = jnp.dot(h1.astype(w2_ref.dtype), w2_ref[...],
                 preferred_element_type=jnp.float32) + b2_ref[...]
    h2 = jnp.maximum(h2, 0.0)

    # Output layer, computed transposed so the batch lands on lanes:
    #   out (O, tile_b) = W3^T (O, H2) @ h2^T (H2, tile_b) + b3^T (O, 1)
    # One XLU transpose of (tile_b, H2) -- MXU/VPU slots have slack here -- and
    # the store becomes lane-dense (unmasked vst, contiguous HBM writeback).
    h2t = jnp.transpose(h2)                                   # (H2, tile_b) f32
    out = jnp.dot(w3t_ref[...], h2t,
                  preferred_element_type=jnp.float32) + b3t_ref[...]
    o_ref[...] = out.astype(o_ref.dtype)


def discriminator_forward(states, actions, params, *, tile_b=None,
                          compute_dtype=jnp.bfloat16):
    """Fused MLP forward. states: (B, S), actions: (B, A). Output f32 (B, O)."""
    B, S = states.shape
    B2, A = actions.shape
    assert B == B2
    w1, b1, w2, b2, w3, b3 = params
    H1 = w1.shape[1]
    H2 = w2.shape[1]
    O = w3.shape[1]

    # Split W1 so the kernel never concatenates along the (unaligned) lane axis.
    w1s = w1[:S]                                   # (S, H1)
    w1a = w1[S:]                                   # (A, H1)
    # Output layer stays f32 (tiny tail matmul), with batch-on-lanes layout.
    w3t = w3.T.astype(jnp.float32)                 # (O, H2)
    b3t = b3.reshape(O, 1).astype(jnp.float32)     # (O, 1) broadcast over lanes
    b1 = b1.reshape(1, H1).astype(jnp.float32)
    b2 = b2.reshape(1, H2).astype(jnp.float32)

    if compute_dtype is not None:
        states = states.astype(compute_dtype)
        actions = actions.astype(compute_dtype)
        w1s = w1s.astype(compute_dtype)
        w1a = w1a.astype(compute_dtype)
        w2 = w2.astype(compute_dtype)

    # Batch tile: multiple of 128 (it is the LANE dim of the output block and
    # the sublane dim of the input blocks -> also satisfies bf16 packing).
    # Default 4096, capped so the grid keeps >= 2 steps when the batch is big
    # enough (v7x has 2 TensorCores and the batch axis is "parallel").
    if tile_b is None:
        tile_b = 4096
        tile_b = min(tile_b, _round_up(pl.cdiv(B, 2), 128))
    tile_b = max(128, _round_up(tile_b, 128))

    grid_b = pl.cdiv(B, tile_b)
    Bp = grid_b * tile_b
    # No jnp.pad: the last block is ragged; OOB input rows are garbage but each
    # output row only depends on its own input row and padded rows are sliced.

    def batch_rows(i):   # inputs: batch tiled along sublanes
        return (i, 0)

    def batch_lanes(i):  # output: batch tiled along lanes
        return (0, i)

    def full(i):
        return (0, 0)

    out = pl.pallas_call(
        _disc_kernel,
        out_shape=jax.ShapeDtypeStruct((O, Bp), jnp.float32),
        grid_spec=pltpu.PrefetchScalarGridSpec(
            num_scalar_prefetch=0,
            grid=(grid_b,),
            in_specs=[
                pl.BlockSpec((tile_b, S), batch_rows),   # states tile
                pl.BlockSpec((tile_b, A), batch_rows),   # actions tile
                pl.BlockSpec((S, H1), full),             # W1 (state part)
                pl.BlockSpec((A, H1), full),             # W1 (action part)
                pl.BlockSpec((1, H1), full),             # b1
                pl.BlockSpec((H1, H2), full),            # W2
                pl.BlockSpec((1, H2), full),             # b2
                pl.BlockSpec((O, H2), full),             # W3^T (f32)
                pl.BlockSpec((O, 1), full),              # b3^T (f32)
            ],
            out_specs=pl.BlockSpec((O, tile_b), batch_lanes),
        ),
        compiler_params=pltpu.CompilerParams(
            dimension_semantics=("parallel",),
            vmem_limit_bytes=32 * 1024 * 1024),
    )(states, actions, w1s, w1a, b1, w2, b2, w3t, b3t)

    # out is (O, Bp) with the batch on lanes; restore (B, O).
    if O == 1:
        return out.reshape(Bp, 1)[:B]      # pure reshape + slice, no transpose
    return out[:, :B].T


def init_params(key, num_states, num_actions, num_hiddens=(128, 128),
                output_shape=1):
    """Deterministic synthetic init (PyTorch-Linear-like uniform fan-in scale)."""
    dims = [num_states + num_actions, *num_hiddens, output_shape]
    params = []
    for i in range(len(dims) - 1):
        fan_in, fan_out = dims[i], dims[i + 1]
        key, kw, kb = jax.random.split(key, 3)
        bound = 1.0 / jnp.sqrt(fan_in)
        w = jax.random.uniform(kw, (fan_in, fan_out), jnp.float32, -bound, bound)
        b = jax.random.uniform(kb, (1, fan_out), jnp.float32, -bound, bound)
        params.extend([w, b])
    return tuple(params)


def _reference(states, actions, params):
    w1, b1, w2, b2, w3, b3 = params
    x = jnp.concatenate([states, actions], axis=-1)
    x = jnp.maximum(x @ w1 + b1, 0.0)
    x = jnp.maximum(x @ w2 + b2, 0.0)
    return x @ w3 + b3


if __name__ == "__main__":
    num_states, num_actions, n_agent = 12, 4, 3
    batch = 8

    key = jax.random.PRNGKey(0)
    key, ks, ka = jax.random.split(key, 3)
    states = jax.random.normal(ks, (batch, num_states), jnp.float32)
    actions = jax.random.normal(ka, (batch, num_actions), jnp.float32)

    # --- decentralized, f32 compute: exact-path check vs reference ---
    key, kp = jax.random.split(key)
    params = init_params(kp, num_states, num_actions, (128, 128), 1)
    out_f32 = jax.block_until_ready(
        discriminator_forward(states, actions, params, compute_dtype=jnp.float32))
    ref = _reference(states, actions, params)
    assert out_f32.shape == (batch, 1)
    assert jnp.allclose(out_f32, ref, atol=1e-4, rtol=1e-4), "f32 mismatch vs reference"

    # --- decentralized, default bf16 compute (f32 accumulation) ---
    out_bf16 = jax.block_until_ready(discriminator_forward(states, actions, params))
    assert out_bf16.shape == (batch, 1)
    assert jnp.max(jnp.abs(out_bf16 - ref)) < 1e-1, "bf16 default path diverged"

    # --- larger batch: multi-step grid + ragged (unpadded) last block ---
    key, ks2, ka2 = jax.random.split(key, 3)
    big_b = 2000  # tile_b -> 1024, grid = 2, last block ragged
    states_big = jax.random.normal(ks2, (big_b, num_states), jnp.float32)
    actions_big = jax.random.normal(ka2, (big_b, num_actions), jnp.float32)
    out_big = jax.block_until_ready(
        discriminator_forward(states_big, actions_big, params,
                              compute_dtype=jnp.float32))
    ref_big = _reference(states_big, actions_big, params)
    assert out_big.shape == (big_b, 1)
    assert jnp.allclose(out_big, ref_big, atol=1e-4, rtol=1e-4), "tiled/ragged mismatch"

    # --- centralized: output dim = n_agent (multi-row transposed tail) ---
    key, kp2 = jax.random.split(key)
    params_c = init_params(kp2, num_states, num_actions, (128, 128), n_agent)
    out_c = jax.block_until_ready(
        discriminator_forward(states, actions, params_c, compute_dtype=jnp.float32))
    ref_c = _reference(states, actions, params_c)
    assert out_c.shape == (batch, n_agent)
    assert jnp.allclose(out_c, ref_c, atol=1e-4, rtol=1e-4), "centralized mismatch"

    # centralized on the default bf16 path too
    out_c_bf16 = jax.block_until_ready(
        discriminator_forward(states, actions, params_c))
    assert jnp.max(jnp.abs(out_c_bf16 - ref_c)) < 1e-1, "centralized bf16 diverged"

    print("KERNEL_OK")
</pallas_src>

<mosaic_0001>
module attributes {stable_mosaic.version = 11 : i64} {
  func.func @_disc_kernel(%arg0: i32, %arg1: memref<128x12xf32, #tpu.memory_space<vmem>>, %arg2: memref<128x4xf32, #tpu.memory_space<vmem>>, %arg3: memref<12x128xf32, #tpu.memory_space<vmem>>, %arg4: memref<4x128xf32, #tpu.memory_space<vmem>>, %arg5: memref<1x128xf32, #tpu.memory_space<vmem>>, %arg6: memref<128x128xf32, #tpu.memory_space<vmem>>, %arg7: memref<1x128xf32, #tpu.memory_space<vmem>>, %arg8: memref<1x128xf32, #tpu.memory_space<vmem>>, %arg9: memref<1x1xf32, #tpu.memory_space<vmem>>, %arg10: memref<1x128xf32, #tpu.memory_space<vmem>>) attributes {dimension_semantics = [#tpu.dimension_semantics<parallel>], iteration_bounds = array<i64: 1>, scalar_prefetch = 0 : i64, scratch_operands = 0 : i64, tpu.core_type = #tpu.core_type<tc>, window_params = [{transform_indices = @transform_0, window_bounds = array<i64: 128, 12>}, {transform_indices = @transform_1, window_bounds = array<i64: 128, 4>}, {pipeline_mode = #tpu.pipeline_mode<synchronous>, transform_indices = @transform_2, window_bounds = array<i64: 12, 128>}, {pipeline_mode = #tpu.pipeline_mode<synchronous>, transform_indices = @transform_3, window_bounds = array<i64: 4, 128>}, {pipeline_mode = #tpu.pipeline_mode<synchronous>, transform_indices = @transform_4, window_bounds = array<i64: 1, 128>}, {pipeline_mode = #tpu.pipeline_mode<synchronous>, transform_indices = @transform_5, window_bounds = array<i64: 128, 128>}, {pipeline_mode = #tpu.pipeline_mode<synchronous>, transform_indices = @transform_6, window_bounds = array<i64: 1, 128>}, {pipeline_mode = #tpu.pipeline_mode<synchronous>, transform_indices = @transform_7, window_bounds = array<i64: 1, 128>}, {pipeline_mode = #tpu.pipeline_mode<synchronous>, transform_indices = @transform_8, window_bounds = array<i64: 1, 1>}, {transform_indices = @transform_9, window_bounds = array<i64: 1, 128>}]} {
    %c0 = arith.constant 0 : index
    %c0_0 = arith.constant 0 : index
    %0 = vector.load %arg1[%c0, %c0_0] : memref<128x12xf32, #tpu.memory_space<vmem>>, vector<128x12xf32>
    %c0_1 = arith.constant 0 : index
    %c0_2 = arith.constant 0 : index
    %1 = vector.load %arg3[%c0_1, %c0_2] : memref<12x128xf32, #tpu.memory_space<vmem>>, vector<12x128xf32>
    %cst = arith.constant dense<0.000000e+00> : vector<128x128xf32>
    %2 = tpu.matmul %0, %1, %cst {dimension_numbers = #tpu.dot_dimension_numbers<[1], [0], [0], [1], [0, 0, 1, 1], [], []>} : vector<128x12xf32>, vector<12x128xf32>, vector<128x128xf32> -> vector<128x128xf32>
    %c0_3 = arith.constant 0 : index
    %c0_4 = arith.constant 0 : index
    %3 = vector.load %arg2[%c0_3, %c0_4] : memref<128x4xf32, #tpu.memory_space<vmem>>, vector<128x4xf32>
    %c0_5 = arith.constant 0 : index
    %c0_6 = arith.constant 0 : index
    %4 = vector.load %arg4[%c0_5, %c0_6] : memref<4x128xf32, #tpu.memory_space<vmem>>, vector<4x128xf32>
    %cst_7 = arith.constant dense<0.000000e+00> : vector<128x128xf32>
    %5 = tpu.matmul %3, %4, %cst_7 {dimension_numbers = #tpu.dot_dimension_numbers<[1], [0], [0], [1], [0, 0, 1, 1], [], []>} : vector<128x4xf32>, vector<4x128xf32>, vector<128x128xf32> -> vector<128x128xf32>
    %6 = arith.addf %2, %5 : vector<128x128xf32>
    %c0_8 = arith.constant 0 : index
    %c0_9 = arith.constant 0 : index
    %7 = vector.load %arg5[%c0_8, %c0_9] : memref<1x128xf32, #tpu.memory_space<vmem>>, vector<1x128xf32>
    %8 = vector.broadcast %7 : vector<1x128xf32> to vector<128x128xf32>
    %9 = arith.addf %6, %8 : vector<128x128xf32>
    %cst_10 = arith.constant 0.000000e+00 : f32
    %10 = vector.broadcast %cst_10 : f32 to vector<128x128xf32>
    %11 = arith.maximumf %9, %10 : vector<128x128xf32>
    %c0_11 = arith.constant 0 : index
    %c0_12 = arith.constant 0 : index
    %12 = vector.load %arg6[%c0_11, %c0_12] : memref<128x128xf32, #tpu.memory_space<vmem>>, vector<128x128xf32>
    %cst_13 = arith.constant dense<0.000000e+00> : vector<128x128xf32>
    %13 = tpu.matmul %11, %12, %cst_13 {dimension_numbers = #tpu.dot_dimension_numbers<[1], [0], [0], [1], [0, 0, 1, 1], [], []>} : vector<128x128xf32>, vector<128x128xf32>, vector<128x128xf32> -> vector<128x128xf32>
    %c0_14 = arith.constant 0 : index
    %c0_15 = arith.constant 0 : index
    %14 = vector.load %arg7[%c0_14, %c0_15] : memref<1x128xf32, #tpu.memory_space<vmem>>, vector<1x128xf32>
    %15 = vector.broadcast %14 : vector<1x128xf32> to vector<128x128xf32>
    %16 = arith.addf %13, %15 : vector<128x128xf32>
    %cst_16 = arith.constant 0.000000e+00 : f32
    %17 = vector.broadcast %cst_16 : f32 to vector<128x128xf32>
    %18 = arith.maximumf %16, %17 : vector<128x128xf32>
    %19 = tpu.transpose %18, [1, 0] : vector<128x128xf32> -> vector<128x128xf32>
    %c0_17 = arith.constant 0 : index
    %c0_18 = arith.constant 0 : index
    %20 = vector.load %arg8[%c0_17, %c0_18] : memref<1x128xf32, #tpu.memory_space<vmem>>, vector<1x128xf32>
    %cst_19 = arith.constant dense<0.000000e+00> : vector<1x128xf32>
    %21 = tpu.matmul %20, %19, %cst_19 {dimension_numbers = #tpu.dot_dimension_numbers<[1], [0], [0], [1], [0, 0, 1, 1], [], []>} : vector<1x128xf32>, vector<128x128xf32>, vector<1x128xf32> -> vector<1x128xf32>
    %c0_20 = arith.constant 0 : index
    %c0_21 = arith.constant 0 : index
    %22 = vector.load %arg9[%c0_20, %c0_21] : memref<1x1xf32, #tpu.memory_space<vmem>>, vector<1x1xf32>
    %23 = vector.broadcast %22 : vector<1x1xf32> to vector<1x128xf32>
    %24 = arith.addf %21, %23 : vector<1x128xf32>
    %c0_22 = arith.constant 0 : index
    %c0_23 = arith.constant 0 : index
    %25 = vector.load %arg10[%c0_22, %c0_23] : memref<1x128xf32, #tpu.memory_space<vmem>>, vector<1x128xf32>
    tpu.vector_store %arg10[%c0_22, %c0_23], %24 {strides = array<i32>} : memref<1x128xf32, #tpu.memory_space<vmem>>, vector<1x128xf32>,
    return
  }
  func.func @transform_0(%arg0: i32) -> (i32, i32) {
    %c0_i32 = arith.constant 0 : i32
    %c0_i32_0 = arith.constant 0 : i32
    return %arg0, %c0_i32 : i32, i32
  }
  func.func @transform_1(%arg0: i32) -> (i32, i32) {
    %c0_i32 = arith.constant 0 : i32
    %c0_i32_0 = arith.constant 0 : i32
    return %arg0, %c0_i32 : i32, i32
  }
  func.func @transform_2(%arg0: i32) -> (i32, i32) {
    %c0_i32 = arith.constant 0 : i32
    %c0_i32_0 = arith.constant 0 : i32
    %c0_i32_1 = arith.constant 0 : i32
    return %c0_i32, %c0_i32_0 : i32, i32
  }
  func.func @transform_3(%arg0: i32) -> (i32, i32) {
    %c0_i32 = arith.constant 0 : i32
    %c0_i32_0 = arith.constant 0 : i32
    %c0_i32_1 = arith.constant 0 : i32
    return %c0_i32, %c0_i32_0 : i32, i32
  }
  func.func @transform_4(%arg0: i32) -> (i32, i32) {
    %c0_i32 = arith.constant 0 : i32
    %c0_i32_0 = arith.constant 0 : i32
    %c0_i32_1 = arith.constant 0 : i32
    return %c0_i32, %c0_i32_0 : i32, i32
  }
  func.func @transform_5(%arg0: i32) -> (i32, i32) {
    %c0_i32 = arith.constant 0 : i32
    %c0_i32_0 = arith.constant 0 : i32
    %c0_i32_1 = arith.constant 0 : i32
    return %c0_i32, %c0_i32_0 : i32, i32
  }
  func.func @transform_6(%arg0: i32) -> (i32, i32) {
    %c0_i32 = arith.constant 0 : i32
    %c0_i32_0 = arith.constant 0 : i32
    %c0_i32_1 = arith.constant 0 : i32
    return %c0_i32, %c0_i32_0 : i32, i32
  }
  func.func @transform_7(%arg0: i32) -> (i32, i32) {
    %c0_i32 = arith.constant 0 : i32
    %c0_i32_0 = arith.constant 0 : i32
    %c0_i32_1 = arith.constant 0 : i32
    return %c0_i32, %c0_i32_0 : i32, i32
  }
  func.func @transform_8(%arg0: i32) -> (i32, i32) {
    %c0_i32 = arith.constant 0 : i32
    %c0_i32_0 = arith.constant 0 : i32
    %c0_i32_1 = arith.constant 0 : i32
    return %c0_i32, %c0_i32_0 : i32, i32
  }
  func.func @transform_9(%arg0: i32) -> (i32, i32) {
    %c0_i32 = arith.constant 0 : i32
    %c0_i32_0 = arith.constant 0 : i32
    return %c0_i32, %arg0 : i32, i32
  }
}

</mosaic_0001>

<bundles_post_ra>
// kernel: tpu_custom_call.1
= control target key start
LH: loop header
LB: loop body
LE: loop exit
PB: predicated region body
PF: predicated region fallthrough
CT: control target
= control target key end

     0   :  { %s1471_s0 = inlined_call_operand.hbm [shape: f32[8,12], index: 0, kind: input, shape index: {}]   ;;  %s1472_s1 = inlined_call_operand.vmem [shape: f32[8,4], index: 1, kind: input, shape index: {}]   ;;  %s1473_s2 = inlined_call_operand.vmem [shape: f32[12,128], index: 2, kind: input, shape index: {}]   ;;  %s1474_s3 = inlined_call_operand.vmem [shape: f32[4,128], index: 3, kind: input, shape index: {}]   ;;  %s1475_s4 = inlined_call_operand.vmem [shape: f32[1,128], index: 4, kind: input, shape index: {}]   ;;  %s1476_s5 = inlined_call_operand.hbm [shape: f32[128,128], index: 5, kind: input, shape index: {}]   ;;  %s1477_s6 = inlined_call_operand.vmem [shape: f32[1,128], index: 6, kind: input, shape index: {}]   ;;  %s1478_s7 = inlined_call_operand.vmem [shape: f32[1,128], index: 7, kind: input, shape index: {}]   ;;  %s1479_s8 = inlined_call_operand.<no memory space> [shape: f32[1,1], index: 8, kind: input, shape index: {}]   ;;  %s1480_s9 = inlined_call_operand.hbm [shape: f32[1,128], index: 9, kind: output, shape index: {}]  }
   0x1   :  { %v14_v0 = vstv %s1479_s8 }
   0x2   :  { %15 = vst [vmem:[#allocation2] sm:$0x1] %v14_v0 }
   0x3   :  { %16 = vsyncpa [#allocation4], 0 }
   0x4   :  { %17 = vsyncpa [#allocation7], 0 }
   0x5   :  { %18 = vsyncpa [#allocation5], 0 }
   0x6   :  { %23 = vsyncadd [#allocation4], 1920  ;;  %s1240_s11 = smov [#allocation3]   ;;  %s1168_s15 = scalar_lea.hbm %s1471_s0, 128 }
   0x7   :  { %s24_s12 = sshll.u32 %s1240_s11, 4  ;;  %p1169_p0 = scmp.ne.s32.totalorder %s1471_s0, %s1168_s15  ;;  %s25_s12 = int_to_ptr.vmem [resolvable:$true] %s24_s12 }
   0x8   :  { %p1172_p1 = scmp.lt.u32.totalorder %s1168_s15, %s1471_s0 }
   0xa   :  { %p1174_p2 = pnand %p1172_p1, %p1169_p0 }
   0xc   :  { %1177 = shalt.err (!%p1174_p2)
}
   0xd   :  { %s1178_s8 = scalar_lea.vmem %s25_s12, 128  ;;  %s1182_s20 = scalar_lea.vmem %s25_s12, 2048 }
   0xe   :  { %p1179_p3 = scmp.ne.s32.totalorder %s25_s12, %s1178_s8  ;;  %p1183_p4 = scmp.lt.s32.totalorder %s25_s12, %s25_s12 }
   0xf   :  { %p1184_p5 = scmp.lt.s32.totalorder %s1182_s20, %s1178_s8 }
  0x11   :  { %p1185_p6 = por %p1184_p5, %p1183_p4 }
  0x13   :  { %p1186_p7 = pnand %p1185_p6, %p1179_p3 }
  0x15   :  { %1189 = shalt.err (!%p1186_p7)
}
  0x16   :  { %s1241_s21 = smov 128   ;;  %s1242_s22 = smov 8  }
  0x17   :  { %30 = dma.hbm_to_vmem [thread:$0]  %s1471_s0, 128, %s25_s12, [#allocation4], %s1241_s21, %s1241_s21, %s1242_s22  }
  0x18   :  { %s1243_s25 = smov [#allocation6]   ;;  %s1190_s29 = scalar_lea.hbm %s1476_s5, 2048 }
  0x19   :  { %s44_s26 = sshll.u32 %s1243_s25, 4  ;;  %p1191_p8 = scmp.ne.s32.totalorder %s1476_s5, %s1190_s29  ;;  %s45_s26 = int_to_ptr.vmem [resolvable:$true] %s44_s26 }
  0x1a   :  { %p1194_p9 = scmp.lt.u32.totalorder %s1190_s29, %s1476_s5 }
  0x1c   :  { %p1196_p10 = pnand %p1194_p9, %p1191_p8 }
  0x1e   :  { %1199 = shalt.err (!%p1196_p10)
}
  0x1f   :  { %s1200_s14 = scalar_lea.vmem %s45_s26, 2048  ;;  %p1205_p12 = scmp.lt.s32.totalorder %s45_s26, %s45_s26 }
  0x20   :  { %p1201_p11 = scmp.ne.s32.totalorder %s45_s26, %s1200_s14  ;;  %p1206_p13 = scmp.lt.s32.totalorder %s1200_s14, %s1200_s14 }
  0x22   :  { %p1207_p0 = por %p1206_p13, %p1205_p12 }
  0x24   :  { %p1208_p1 = pnand %p1207_p0, %p1201_p11 }
  0x26   :  { %1211 = shalt.err (!%p1208_p1)
}
  0x27   :  { %50 = dma.hbm_to_vmem [thread:$0]  %s1476_s5, 2048, %s45_s26, [#allocation7], %s1241_s21, %s1241_s21, %s1242_s22  }
  0x28   :  { %1234 = dma.done.wait [#allocation4], 2048  }
  0x29   :  { %1235 = vsyncadd [#allocation4], 4294965248 }
  0x2a   :  { %1236 = dma.done.wait [#allocation7], 2048  }
  0x2b   :  { %1237 = vsyncadd [#allocation7], 4294965248  ;;  %vm147_vm0 = vcmask 1043456   ;;  %vm1244_vm1 = vmmov 1   ;;  %vm98_vm3 = vcmask 31744   ;;  %v79_v2 = vld [vmem:[%s1473_s2] sm:$0xff] }
  0x2c   :  { %vm1327_vm2 = vmpackc.low %vm147_vm0, %vm1244_vm1  ;;  %v80_v3 = vld [vmem:[%s1473_s2 + $0x8] sm:$0xf]  ;;  %v97_v4 = vld [vmem:[%s1474_s3] sm:$0xf]  ;;  %vm296_vm4 = vcmask 97280   ;;  %vm1246_vm5 = vmmov 0  }
  0x2d   :  { %v1079_v5 = vpack.c.bf16 %v80_v3, %v79_v2  ;;  %934 = vmatprep.subr.msk.mxu1 %vm147_vm0, %v97_v4  ;;  %v81_v6 = vld [vmem:[%s1472_s1] sm:$0xff]  ;;  %v82_v7 = vld [vmem:[%s1472_s1 + $0x8] sm:$0xff]  ;;  %v83_v9 = vld [vmem:[%s1472_s1 + $0x10] sm:$0xff]  ;;  %s1249_s26 = smov [#allocation8]  }
  0x2e   :  { %v63_v8 = vld [vmem:[#allocation3] sm:$0xff]  ;;  %935 = vmatpush3.msk.msra.mxu1 %vm147_vm0, %v97_v4  ;;  %936 = vmatprep.mubr.msk.f32.mxu1 %vm98_vm3, %v81_v6  ;;  %v64_v10 = vld [vmem:[#allocation3 + $0x8] sm:$0xff]  ;;  %v84_v11 = vld [vmem:[%s1472_s1 + $0x18] sm:$0xff]  ;;  %s804_s27 = sshll.u32 %s1249_s26, 4  ;;  %s805_s27 = int_to_ptr.vmem [resolvable:$true] %s804_s27 }
  0x2f   :  { %1081 = vmatprep.subr.msk.bf16.mxu0 %vm1327_vm2, %v1079_v5  ;;  %937 = vmatmul.mubr.msk.f32.vlgmr.msra.gmra.mrb[0].mxu1 %vm98_vm3, %v82_v7  ;;  %v65_v12 = vld [vmem:[#allocation3 + $0x10] sm:$0xff]  ;;  %v85_v13 = vld [vmem:[%s1472_s1 + $0x20] sm:$0xff]  ;;  %v86_v15 = vld [vmem:[%s1472_s1 + $0x28] sm:$0xff]  ;;  %s1212_s28 = scalar_lea.vmem %s805_s27, 16  ;;  %s1216_s29 = scalar_lea.vmem %s805_s27, 32 }
  0x30   :  { %1084 = vmatpush3.bf16.msk.msra.mxu0 %vm1327_vm2, %v1079_v5  ;;  %964 = vmatprep.mubr.msk.f32.mxu0 %vm296_vm4, %v63_v8  ;;  %v66_v14 = vld [vmem:[#allocation3 + $0x18] sm:$0xff]  ;;  %v67_v16 = vld [vmem:[#allocation3 + $0x20] sm:$0xff]  ;;  %v87_v17 = vld [vmem:[%s1472_s1 + $0x30] sm:$0xff]  ;;  %p1213_p2 = scmp.ne.s32.totalorder %s805_s27, %s1212_s28  ;;  %p1217_p3 = scmp.lt.s32.totalorder %s805_s27, %s805_s27 }
  0x31   :  { %939 = vmatprep.mubr.msk.f32.mxu1 %vm98_vm3, %v83_v9  ;;  %v532_v18 = vld [vmem:[#allocation6] sm:$0xff]  ;;  %v68_v19 = vld [vmem:[#allocation3 + $0x28] sm:$0xff]  ;;  %v88_v20 = vld [vmem:[%s1472_s1 + $0x38] sm:$0xff]  ;;  %p1218_p4 = scmp.lt.s32.totalorder %s1216_s29, %s1212_s28 }
  0x32   :  { %v533_v21 = vld [vmem:[#allocation6 + $0x8] sm:$0xff]  ;;  %v69_v22 = vld [vmem:[#allocation3 + $0x30] sm:$0xff]  ;;  %v89_v23 = vld [vmem:[%s1472_s1 + $0x40] sm:$0xff] }
  0x33   :  { %965 = vmatmul.mubr.msk.f32.vlgmr.msra.gmra.mrb[0].mxu0 %vm296_vm4, %v64_v10  ;;  %940 = vmatmul.mubr.msk.f32.gmra.mrb[2].mxu1 %vm98_vm3, %v84_v11  ;;  %v1085_v24 = vpack.c.bf16 %v533_v21, %v532_v18  ;;  %v534_v25 = vld [vmem:[#allocation6 + $0x10] sm:$0xff]  ;;  %v535_v26 = vld [vmem:[#allocation6 + $0x18] sm:$0xff]  ;;  %v90_v28 = vld [vmem:[%s1472_s1 + $0x48] sm:$0xff]  ;;  %p1219_p5 = por %p1218_p4, %p1217_p3 }
  0x34   :  { %967 = vmatprep.mubr.msk.f32.mxu0 %vm296_vm4, %v65_v12  ;;  %942 = vmatprep.mubr.msk.f32.mxu1 %vm98_vm3, %v85_v13  ;;  %v70_v27 = vld [vmem:[#allocation3 + $0x38] sm:$0xff]  ;;  %v71_v29 = vld [vmem:[#allocation3 + $0x40] sm:$0xff]  ;;  %v91_v30 = vld [vmem:[%s1472_s1 + $0x50] sm:$0xff]  ;;  %v1089_v31 = vpack.c.bf16 %v535_v26, %v534_v25 }
  0x35   :  { %1086 = vmatprep.subr.bf16.mxu0 %v1085_v24  ;;  %v536_v32 = vld [vmem:[#allocation6 + $0x20] sm:$0xff]  ;;  %v537_v33 = vld [vmem:[#allocation6 + $0x28] sm:$0xff]  ;;  %v92_v35 = vld [vmem:[%s1472_s1 + $0x58] sm:$0xff]  ;;  %p1220_p6 = pnand %p1219_p5, %p1213_p2 }
  0x36   :  { %1088 = vmatpush3.bf16.msra.mxu0 %v1085_v24  ;;  %v72_v34 = vld [vmem:[#allocation3 + $0x48] sm:$0xff]  ;;  %v73_v36 = vld [vmem:[#allocation3 + $0x50] sm:$0xff]  ;;  %v93_v37 = vld [vmem:[%s1472_s1 + $0x60] sm:$0xff]  ;;  %v1093_v38 = vpack.c.bf16 %v537_v33, %v536_v32 }
  0x37   :  { %968 = vmatmul.mubr.msk.f32.gmra.mrb[2].mxu0 %vm296_vm4, %v66_v14  ;;  %943 = vmatmul.mubr.msk.f32.gmra.mrb[4].mxu1 %vm98_vm3, %v86_v15  ;;  %v538_v39 = vld [vmem:[#allocation6 + $0x30] sm:$0xff]  ;;  %v539_v40 = vld [vmem:[#allocation6 + $0x38] sm:$0xff]  ;;  %v75_v42 = vld [vmem:[#allocation3 + $0x60] sm:$0xff] }
  0x38   :  { %970 = vmatprep.mubr.msk.f32.mxu0 %vm296_vm4, %v67_v16  ;;  %945 = vmatprep.mubr.msk.f32.mxu1 %vm98_vm3, %v87_v17  ;;  %v74_v41 = vld [vmem:[#allocation3 + $0x58] sm:$0xff]  ;;  %v94_v43 = vld [vmem:[%s1472_s1 + $0x68] sm:$0xff]  ;;  %v95_v44 = vld [vmem:[%s1472_s1 + $0x70] sm:$0xff]  ;;  %v1097_v45 = vpack.c.bf16 %v539_v40, %v538_v39 }
  0x39   :  { %1090 = vmatprep.subr.bf16.mxu0 %v1089_v31  ;;  %v540_v46 = vld [vmem:[#allocation6 + $0x40] sm:$0xff]  ;;  %v541_v47 = vld [vmem:[#allocation6 + $0x48] sm:$0xff]  ;;  %v96_v49 = vld [vmem:[%s1472_s1 + $0x78] sm:$0xff] }
  0x3a   :  { %1092 = vmatpush3.bf16.msra.mxu0 %v1089_v31  ;;  %v76_v48 = vld [vmem:[#allocation3 + $0x68] sm:$0xff]  ;;  %v1101_v50 = vpack.c.bf16 %v541_v47, %v540_v46  ;;  %v542_v51 = vld [vmem:[#allocation6 + $0x50] sm:$0xff]  ;;  %v543_v52 = vld [vmem:[#allocation6 + $0x58] sm:$0xff] }
  0x3b   :  { %971 = vmatmul.mubr.msk.f32.gmra.mrb[4].mxu0 %vm296_vm4, %v68_v19  ;;  %946 = vmatmul.mubr.msk.f32.gmra.mrb[6].mxu1 %vm98_vm3, %v88_v20  ;;  %v77_v53 = vld [vmem:[#allocation3 + $0x70] sm:$0xff]  ;;  %v1105_v54 = vpack.c.bf16 %v543_v52, %v542_v51  ;;  %v78_v55 = vld [vmem:[#allocation3 + $0x78] sm:$0xff]  ;;  %v544_v56 = vld [vmem:[#allocation6 + $0x60] sm:$0xff] }
  0x3c   :  { %973 = vmatprep.mubr.msk.f32.mxu0 %vm296_vm4, %v69_v22  ;;  %948 = vmatprep.mubr.msk.f32.mxu1 %vm98_vm3, %v89_v23  ;;  %v545_v57 = vld [vmem:[#allocation6 + $0x68] sm:$0xff]  ;;  %v546_v59 = vld [vmem:[#allocation6 + $0x70] sm:$0xff]  ;;  %v547_v60 = vld [vmem:[#allocation6 + $0x78] sm:$0xff] }
  0x3d   :  { %1094 = vmatprep.subr.bf16.mxu0 %v1093_v38  ;;  %v1109_v58 = vpack.c.bf16 %v545_v57, %v544_v56  ;;  %v1113_v61 = vpack.c.bf16 %v547_v60, %v546_v59  ;;  %v1427_v1 = vld [vmem:[%s1475_s4] ss:$0 sm:$0xff] }
  0x3e   :  { %1096 = vmatpush3.bf16.msra.mxu0 %v1093_v38 }
  0x3f   :  { %974 = vmatmul.mubr.msk.f32.gmra.mrb[6].mxu0 %vm296_vm4, %v70_v27  ;;  %949 = vmatmul.mubr.msk.f32.gmra.mrb[8].mxu1 %vm98_vm3, %v90_v28 }
  0x40   :  { %976 = vmatprep.mubr.msk.f32.mxu0 %vm296_vm4, %v71_v29  ;;  %951 = vmatprep.mubr.msk.f32.mxu1 %vm98_vm3, %v91_v30 }
  0x41   :  { %1098 = vmatprep.subr.bf16.mxu0 %v1097_v45 }
  0x42   :  { %1100 = vmatpush3.bf16.msra.mxu0 %v1097_v45 }
  0x43   :  { %977 = vmatmul.mubr.msk.f32.gmra.mrb[8].mxu0 %vm296_vm4, %v72_v34  ;;  %952 = vmatmul.mubr.msk.f32.gmra.mrb[10].mxu1 %vm98_vm3, %v92_v35 }
  0x44   :  { %979 = vmatprep.mubr.msk.f32.mxu0 %vm296_vm4, %v73_v36  ;;  %954 = vmatprep.mubr.msk.f32.mxu1 %vm98_vm3, %v93_v37 }
  0x45   :  { %1102 = vmatprep.subr.bf16.mxu0 %v1101_v50 }
  0x46   :  { %1104 = vmatpush3.bf16.msra.mxu0 %v1101_v50 }
  0x47   :  { %980 = vmatmul.mubr.msk.f32.gmra.mrb[10].mxu0 %vm296_vm4, %v74_v41  ;;  %955 = vmatmul.mubr.msk.f32.gmra.mrb[12].mxu1 %vm98_vm3, %v94_v43 }
  0x48   :  { %982 = vmatprep.mubr.msk.f32.mxu0 %vm296_vm4, %v75_v42  ;;  %957 = vmatprep.mubr.msk.f32.mxu1 %vm98_vm3, %v95_v44 }
  0x49   :  { %1106 = vmatprep.subr.bf16.mxu0 %v1105_v54 }
  0x4a   :  { %1108 = vmatpush3.bf16.msra.mxu0 %v1105_v54 }
  0x4b   :  { %983 = vmatmul.mubr.msk.f32.gmra.mrb[12].mxu0 %vm296_vm4, %v76_v48  ;;  %958 = vmatmul.mubr.msk.f32.gmra.mrb[14].mxu1 %vm98_vm3, %v96_v49 }
  0x4c   :  { %985 = vmatprep.mubr.msk.f32.mxu0 %vm296_vm4, %v77_v53  ;;  %1110 = vmatprep.subr.bf16.mxu0 %v1109_v58 }
  0x4e   :  { %1112 = vmatpush3.bf16.msra.mxu0 %v1109_v58 }
  0x4f   :  { %986 = vmatmul.mubr.msk.f32.gmra.mrb[14].mxu0 %vm296_vm4, %v78_v55  ;;  %1114 = vmatprep.subr.bf16.mxu0 %v1113_v61 }
  0x52   :  { %1116 = vmatpush3.bf16.msra.mxu0 %v1113_v61 }
 0x102   :  { %v938_v62 = vpop.f32.mrb[0].mxu1 }
 0x103   :  { %v217_v63 = vpop.f32.mrb[1].mxu1 }
 0x106   :  { %v966_v0 = vpop.f32.mrb[0].mxu0  ;;  %v941_v2 = vpop.f32.mrb[2].mxu1 }
 0x107   :  { %v420_v3 = vadd.f32 %v966_v0, %v938_v62  ;;  %v414_v4 = vpop.f32.mrb[1].mxu0  ;;  %v227_v5 = vpop.f32.mrb[3].mxu1 }
 0x108   :  { %v415_v6 = vadd.f32 %v414_v4, %v217_v63 }
 0x109   :  { %v501_v7 = vadd.f32 %v1427_v1, %v420_v3 }
 0x10a   :  { %v500_v8 = vadd.f32 %v1427_v1, %v415_v6  ;;  %v969_v9 = vpop.f32.mrb[2].mxu0  ;;  %v944_v10 = vpop.f32.mrb[4].mxu1 }
 0x10b   :  { %v430_v11 = vadd.f32 %v969_v9, %v941_v2  ;;  %v424_v12 = vpop.f32.mrb[3].mxu0  ;;  %v237_v13 = vpop.f32.mrb[5].mxu1  ;;  %v517_v16 = vmax.f32 %v501_v7, 0.0 }
 0x10c   :  { %v516_v14 = vmax.f32 %v500_v8, 0.0  ;;  %v425_v15 = vadd.f32 %v424_v12, %v227_v5 }
 0x10d   :  { %v503_v17 = vadd.f32 %v1427_v1, %v430_v11 }
 0x10e   :  { %v502_v18 = vadd.f32 %v1427_v1, %v425_v15  ;;  %1020 = vmatprep.mubr.f32.mxu0 %v516_v14  ;;  %v972_v19 = vpop.f32.mrb[4].mxu0  ;;  %v947_v20 = vpop.f32.mrb[6].mxu1 }
 0x10f   :  { %v519_v21 = vmax.f32 %v503_v17, 0.0  ;;  %1021 = vmatmul.mubr.f32.vlgmr.msra.gmra.mrb[16].mxu0 %v517_v16  ;;  %v440_v22 = vadd.f32 %v972_v19, %v944_v10  ;;  %v434_v23 = vpop.f32.mrb[5].mxu0  ;;  %v247_v24 = vpop.f32.mrb[7].mxu1  ;;  %v1245_v16 = vmov 0.0|0.0   ;;  %v1247_v17 = vmov 0.0  }
 0x110   :  { %v518_v25 = vmax.f32 %v502_v18, 0.0  ;;  %v435_v26 = vadd.f32 %v434_v23, %v237_v13  ;;  %1117 = vmatprep.subr.bf16.mxu1 %v1245_v16  ;;  %1076 = vmatprep.mubr.msk.f32.mxu1 %vm1246_vm5, %v1247_v17  ;;  %v717_v18 = vld [vmem:[#allocation2] sm:$0x1]  ;;  %v1248_v19 = vmov 0  }
 0x111   :  { %v505_v27 = vadd.f32 %v1427_v1, %v440_v22  ;;  %1167 = vset.pattern.permute.xlu0 %v1248_v19 }
 0x112   :  { %1023 = vmatprep.mubr.f32.mxu0 %v518_v25  ;;  %v504_v28 = vadd.f32 %v1427_v1, %v435_v26  ;;  %v975_v29 = vpop.f32.mrb[6].mxu0  ;;  %v950_v30 = vpop.f32.mrb[8].mxu1  ;;  %720 = vperm.xlu0 %1167, %v717_v18  }
 0x113   :  { %v521_v31 = vmax.f32 %v505_v27, 0.0  ;;  %1024 = vmatmul.mubr.f32.gmra.mrb[18].mxu0 %v519_v21  ;;  %v450_v32 = vadd.f32 %v975_v29, %v947_v20  ;;  %v444_v33 = vpop.f32.mrb[7].mxu0  ;;  %v257_v34 = vpop.f32.mrb[9].mxu1  ;;  %v849_v20 = vld [vmem:[%s1477_s6] ss:$0 sm:$0xff] }
 0x114   :  { %v520_v35 = vmax.f32 %v504_v28, 0.0  ;;  %v445_v36 = vadd.f32 %v444_v33, %v247_v24 }
 0x115   :  { %v507_v37 = vadd.f32 %v1427_v1, %v450_v32 }
 0x116   :  { %1026 = vmatprep.mubr.f32.mxu0 %v520_v35  ;;  %v506_v38 = vadd.f32 %v1427_v1, %v445_v36  ;;  %v978_v39 = vpop.f32.mrb[8].mxu0  ;;  %v953_v40 = vpop.f32.mrb[10].mxu1 }
 0x117   :  { %v523_v41 = vmax.f32 %v507_v37, 0.0  ;;  %1027 = vmatmul.mubr.f32.gmra.mrb[20].mxu0 %v521_v31  ;;  %v460_v42 = vadd.f32 %v978_v39, %v950_v30  ;;  %v454_v43 = vpop.f32.mrb[9].mxu0  ;;  %v267_v44 = vpop.f32.mrb[11].mxu1 }
 0x118   :  { %v522_v45 = vmax.f32 %v506_v38, 0.0  ;;  %v455_v46 = vadd.f32 %v454_v43, %v257_v34 }
 0x119   :  { %v509_v47 = vadd.f32 %v1427_v1, %v460_v42 }
 0x11a   :  { %1029 = vmatprep.mubr.f32.mxu0 %v522_v45  ;;  %v508_v48 = vadd.f32 %v1427_v1, %v455_v46  ;;  %v981_v49 = vpop.f32.mrb[10].mxu0  ;;  %v956_v50 = vpop.f32.mrb[12].mxu1 }
 0x11b   :  { %v525_v51 = vmax.f32 %v509_v47, 0.0  ;;  %1030 = vmatmul.mubr.f32.gmra.mrb[22].mxu0 %v523_v41  ;;  %v470_v52 = vadd.f32 %v981_v49, %v953_v40  ;;  %v464_v53 = vpop.f32.mrb[11].mxu0  ;;  %v277_v54 = vpop.f32.mrb[13].mxu1 }
 0x11c   :  { %v524_v55 = vmax.f32 %v508_v48, 0.0  ;;  %v465_v56 = vadd.f32 %v464_v53, %v267_v44 }
 0x11d   :  { %v511_v57 = vadd.f32 %v1427_v1, %v470_v52 }
 0x11e   :  { %1032 = vmatprep.mubr.f32.mxu0 %v524_v55  ;;  %v510_v58 = vadd.f32 %v1427_v1, %v465_v56  ;;  %v984_v59 = vpop.f32.mrb[12].mxu0  ;;  %v959_v60 = vpop.f32.mrb[14].mxu1 }
 0x11f   :  { %v527_v61 = vmax.f32 %v511_v57, 0.0  ;;  %1033 = vmatmul.mubr.f32.gmra.mrb[24].mxu0 %v525_v51  ;;  %v480_v62 = vadd.f32 %v984_v59, %v956_v50  ;;  %v474_v63 = vpop.f32.mrb[13].mxu0  ;;  %v287_v0 = vpop.f32.mrb[15].mxu1 }
 0x120   :  { %v526_v2 = vmax.f32 %v510_v58, 0.0  ;;  %v475_v3 = vadd.f32 %v474_v63, %v277_v54 }
 0x121   :  { %v513_v4 = vadd.f32 %v1427_v1, %v480_v62 }
 0x122   :  { %1035 = vmatprep.mubr.f32.mxu0 %v526_v2  ;;  %v512_v5 = vadd.f32 %v1427_v1, %v475_v3  ;;  %v987_v6 = vpop.f32.mrb[14].mxu0 }
 0x123   :  { %v529_v7 = vmax.f32 %v513_v4, 0.0  ;;  %1036 = vmatmul.mubr.f32.gmra.mrb[26].mxu0 %v527_v61  ;;  %v490_v8 = vadd.f32 %v987_v6, %v959_v60  ;;  %v484_v9 = vpop.f32.mrb[15].mxu0 }
 0x124   :  { %v528_v10 = vmax.f32 %v512_v5, 0.0  ;;  %v485_v11 = vadd.f32 %v484_v9, %v287_v0 }
 0x125   :  { %v515_v12 = vadd.f32 %v1427_v1, %v490_v8 }
 0x126   :  { %1038 = vmatprep.mubr.f32.mxu0 %v528_v10  ;;  %v514_v13 = vadd.f32 %v1427_v1, %v485_v11 }
 0x127   :  { %v531_v14 = vmax.f32 %v515_v12, 0.0  ;;  %1039 = vmatmul.mubr.f32.gmra.mrb[28].mxu0 %v529_v7 }
 0x128   :  { %v530_v15 = vmax.f32 %v514_v13, 0.0  ;;  %v716_v13 = vld [vmem:[%s1478_s7] sm:$0x1] }
 0x12a   :  { %1041 = vmatprep.mubr.f32.mxu0 %v530_v15 }
 0x12b   :  { %1042 = vmatmul.mubr.f32.gmra.mrb[30].mxu0 %v531_v14  ;;  %v723_v14 = vlaneseq }
 0x12d   :  { %v724_v15 = vshrl.u32 %v723_v14, 7 }
 0x12f   :  { %v725_v17 = vsub.s32 0, %v724_v15 }
 0x191   :  { %v721_v18 = vpop.permute.xlu0 %720 }
 0x192   :  { %v726_v19 = vrot.slane %v721_v18, %v725_v17 }
 0x1e2   :  { %v1022_v1 = vpop.f32.mrb[16].mxu0 }
 0x1e3   :  { %v627_v21 = vadd.f32 %v1022_v1, %v849_v20  ;;  %v621_v22 = vpop.f32.mrb[17].mxu0 }
 0x1e4   :  { %v622_v23 = vadd.f32 %v849_v20, %v621_v22 }
 0x1e5   :  { %v701_v24 = vmax.f32 %v627_v21, 0.0 }
 0x1e6   :  { %v700_v25 = vmax.f32 %v622_v23, 0.0  ;;  %v1025_v26 = vpop.f32.mrb[18].mxu0 }
 0x1e7   :  { %v637_v27 = vadd.f32 %v1025_v26, %v849_v20  ;;  %v631_v28 = vpop.f32.mrb[19].mxu0 }
 0x1e8   :  { %v1118_v29 = vpack.c.bf16 %v701_v24, %v700_v25  ;;  %v632_v30 = vadd.f32 %v849_v20, %v631_v28 }
 0x1e9   :  { %v703_v31 = vmax.f32 %v637_v27, 0.0 }
 0x1ea   :  { %v702_v32 = vmax.f32 %v632_v30, 0.0  ;;  %1119 = vmatpush3.bf16.xpose.msra.mxu1 %v1118_v29  ;;  %v1028_v33 = vpop.f32.mrb[20].mxu0 }
 0x1eb   :  { %v647_v34 = vadd.f32 %v1028_v33, %v849_v20  ;;  %v641_v35 = vpop.f32.mrb[21].mxu0  ;;  %1120 = vmatprep.subr.bf16.mxu1 %v1245_v16 }
 0x1ec   :  { %v1121_v36 = vpack.c.bf16 %v703_v31, %v702_v32  ;;  %v642_v37 = vadd.f32 %v849_v20, %v641_v35 }
 0x1ed   :  { %v705_v38 = vmax.f32 %v647_v34, 0.0 }
 0x1ee   :  { %v704_v39 = vmax.f32 %v642_v37, 0.0  ;;  %v1031_v40 = vpop.f32.mrb[22].mxu0 }
 0x1ef   :  { %v657_v41 = vadd.f32 %v1031_v40, %v849_v20  ;;  %v651_v42 = vpop.f32.mrb[23].mxu0 }
 0x1f0   :  { %v1124_v43 = vpack.c.bf16 %v705_v38, %v704_v39  ;;  %v652_v44 = vadd.f32 %v849_v20, %v651_v42 }
 0x1f1   :  { %v707_v45 = vmax.f32 %v657_v41, 0.0 }
 0x1f2   :  { %1122 = vmatpush3.bf16.xpose.msra.mxu1 %v1121_v36  ;;  %v706_v46 = vmax.f32 %v652_v44, 0.0  ;;  %v1034_v47 = vpop.f32.mrb[24].mxu0 }
 0x1f3   :  { %1123 = vmatprep.subr.bf16.mxu1 %v1245_v16  ;;  %v667_v48 = vadd.f32 %v1034_v47, %v849_v20  ;;  %v661_v49 = vpop.f32.mrb[25].mxu0 }
 0x1f4   :  { %v1127_v50 = vpack.c.bf16 %v707_v45, %v706_v46  ;;  %v662_v51 = vadd.f32 %v849_v20, %v661_v49 }
 0x1f5   :  { %v709_v52 = vmax.f32 %v667_v48, 0.0 }
 0x1f6   :  { %v708_v53 = vmax.f32 %v662_v51, 0.0  ;;  %v1037_v54 = vpop.f32.mrb[26].mxu0 }
 0x1f7   :  { %v677_v55 = vadd.f32 %v1037_v54, %v849_v20  ;;  %v671_v56 = vpop.f32.mrb[27].mxu0 }
 0x1f8   :  { %v1130_v57 = vpack.c.bf16 %v709_v52, %v708_v53  ;;  %v672_v58 = vadd.f32 %v849_v20, %v671_v56 }
 0x1f9   :  { %v711_v59 = vmax.f32 %v677_v55, 0.0 }
 0x1fa   :  { %1125 = vmatpush3.bf16.xpose.msra.mxu1 %v1124_v43  ;;  %v710_v60 = vmax.f32 %v672_v58, 0.0  ;;  %v1040_v61 = vpop.f32.mrb[28].mxu0 }
 0x1fb   :  { %1126 = vmatprep.subr.bf16.mxu1 %v1245_v16  ;;  %v687_v62 = vadd.f32 %v1040_v61, %v849_v20  ;;  %v681_v63 = vpop.f32.mrb[29].mxu0 }
 0x1fc   :  { %v1133_v0 = vpack.c.bf16 %v711_v59, %v710_v60  ;;  %v682_v2 = vadd.f32 %v849_v20, %v681_v63 }
 0x1fd   :  { %v713_v3 = vmax.f32 %v687_v62, 0.0 }
 0x1fe   :  { %v712_v4 = vmax.f32 %v682_v2, 0.0  ;;  %v1043_v5 = vpop.f32.mrb[30].mxu0 }
 0x1ff   :  { %v697_v6 = vadd.f32 %v1043_v5, %v849_v20  ;;  %v691_v7 = vpop.f32.mrb[31].mxu0 }
 0x200   :  { %v1136_v8 = vpack.c.bf16 %v713_v3, %v712_v4  ;;  %v692_v9 = vadd.f32 %v849_v20, %v691_v7 }
 0x201   :  { %v715_v10 = vmax.f32 %v697_v6, 0.0 }
 0x202   :  { %1128 = vmatpush3.bf16.xpose.msra.mxu1 %v1127_v50  ;;  %v714_v11 = vmax.f32 %v692_v9, 0.0 }
 0x203   :  { %1129 = vmatprep.subr.bf16.mxu1 %v1245_v16 }
 0x204   :  { %v1139_v12 = vpack.c.bf16 %v715_v10, %v714_v11 }
 0x20a   :  { %1131 = vmatpush3.bf16.xpose.msra.mxu1 %v1130_v57 }
 0x20b   :  { %1132 = vmatprep.subr.bf16.mxu1 %v1245_v16 }
 0x212   :  { %1134 = vmatpush3.bf16.xpose.msra.mxu1 %v1133_v0 }
 0x213   :  { %1135 = vmatprep.subr.bf16.mxu1 %v1245_v16 }
 0x21a   :  { %1137 = vmatpush3.bf16.xpose.msra.mxu1 %v1136_v8 }
 0x21b   :  { %1138 = vmatprep.subr.bf16.mxu1 %v1245_v16 }
 0x222   :  { %1140 = vmatpush3.bf16.xpose.msra.mxu1 %v1139_v12 }
 0x229   :  { %1077 = vmatmul.mubr.f32.vlgmr.msra.gmra.mrb[16].mxu1 %v716_v13 }
 0x2fc   :  { %v793_v20 = vpop.f32.mrb[16].mxu1 }
 0x2fd   :  { %v794_v1 = vadd.f32 %v793_v20, %v726_v19  ;;  %v1078_v21 = vpop.f32.mrb[17].mxu1 }
 0x2ff   :  { %797 = vst [vmem:[#allocation8] sm:$0x1] %v794_v1 }
 0x300   :  { %1223 = shalt.err (!%p1220_p6)
}
 0x301   :  { %s1224_s10 = scalar_lea.hbm %s1480_s9, 16 }
 0x302   :  { %p1225_p7 = scmp.ne.s32.totalorder %s1480_s9, %s1224_s10  ;;  %p1228_p8 = scmp.lt.u32.totalorder %s1224_s10, %s1480_s9 }
 0x304   :  { %p1230_p9 = pnand %p1228_p8, %p1225_p7 }
 0x306   :  { %1233 = shalt.err (!%p1230_p9)
}
 0x307   :  { %807 = dma.vmem_to_hbm [thread:$0]  %s805_s27, 16, %s1480_s9, [#allocation5]  }
 0x308   :  { %1238 = dma.done.wait [#allocation5], 16  }
 0x309   :  { %1239 = vsyncadd [#allocation5], 4294967280 }
 0x30a   :  { %811 = vsyncpa [#allocation4], 1 }
 0x30b   :  { %812 = vsyncpa [#allocation7], 1 }
 0x30c   :  { %813 = vsyncpa [#allocation5], 1 }

</bundles_post_ra>
